<compile_context>
chip_gen: v7x
topology: tpu7x:2x2x1
jax: 0.10.0
libtpu: 0.0.40
codegen_flags: <defaults>
</compile_context>

<pallas_src>
import jax
import jax.numpy as jnp
from jax.experimental import pallas as pl
from jax.experimental.pallas import tpu as pltpu


def _round_up(v, m):
    return (v + m - 1) // m * m


def _feature_embedder_kernel(x_ref, e_ref, b_ref, o_ref):
    # x_ref: (BT, DT)         feature values for BT batch rows, DT features
    # e_ref: (DT, DT*OUT)     block-diagonal expansion of the multiplicative table
    # b_ref: (1, DT*OUT)      flattened additive table (broadcast over batch)
    # o_ref: (BT, DT*OUT)     lane-dense output tile (row-major == torch layout)
    acc = jnp.dot(x_ref[...], e_ref[...],
                  preferred_element_type=jnp.float32,
                  precision=jax.lax.Precision.HIGHEST)
    o_ref[...] = (acc + b_ref[...]).astype(o_ref.dtype)


def _vmem_capacity_bytes():
    try:
        cap = int(pltpu.get_tpu_info().vmem_capacity_bytes)
        if cap > 0:
            return cap
    except Exception:
        pass
    return 64 * 1024 * 1024  # conservative fallback (v7x per-core physical VMEM)


def _choose_tiles(batch, input_dim, output_dim, budget_bytes):
    """Pick (batch_tile, num_batch_tiles, d_tile, num_d_tiles).

    Constraints honoured:
      * When the feature axis is tiled, d_tile % 128 == 0 (x-block lane rule),
        hence d_tile*output_dim % 128 == 0 (lane-dense, unmasked output stores).
      * Double-buffered x/out/E/B blocks fit within budget_bytes.
      * batch_tile % 8 == 0 whenever more than one batch tile is used.
    """
    def e_block_bytes(dt):
        return _round_up(dt, 8) * _round_up(dt * output_dim, 128) * 4

    # --- feature-axis tiling -------------------------------------------------
    if input_dim <= 256 or 2 * e_block_bytes(input_dim) <= budget_bytes // 2:
        d_tile, num_d = input_dim, 1
    else:
        cands = [dt for dt in (256, 128)
                 if 2 * e_block_bytes(dt) <= budget_bytes // 2]
        if not cands:
            cands = [128]
        # minimize feature padding; prefer the larger tile on ties
        d_tile = min(cands, key=lambda dt: (pl.cdiv(input_dim, dt) * dt, -dt))
        num_d = pl.cdiv(input_dim, d_tile)

    # --- batch-axis tiling (tables included in the budget) -------------------
    tile_out_pad = _round_up(d_tile * output_dim, 128)
    table_bytes = 2 * e_block_bytes(d_tile) + 2 * 8 * tile_out_pad * 4
    remaining = max(budget_bytes - table_bytes, 1 << 20)
    per_b = 2 * 4 * (_round_up(d_tile, 128) + tile_out_pad)  # x + out, 2 buffers
    cap_bt = max(1, remaining // per_b)

    if cap_bt >= batch:
        batch_tile, num_bt = batch, 1
    else:
        cap_bt = max(8, (cap_bt // 8) * 8)
        num_bt = pl.cdiv(batch, cap_bt)
        batch_tile = None
        # Prefer an exact (pad-free) split so the trailing output slice vanishes.
        for n in range(num_bt, num_bt + 33):
            if batch % n == 0 and (batch // n) % 8 == 0 and batch // n <= cap_bt:
                batch_tile, num_bt = batch // n, n
                break
        if batch_tile is None:
            batch_tile = _round_up(pl.cdiv(batch, num_bt), 8)

    # Give the v7x megacore two grid points to shard when the whole problem
    # would otherwise be a single grid step.
    if num_bt == 1 and num_d == 1 and batch >= 16 and batch % 16 == 0:
        num_bt, batch_tile = 2, batch // 2

    return batch_tile, num_bt, d_tile, num_d


def _build_affine_tables(embedding_weights, embedding_bias, metadata,
                         multiply_weights):
    """Fold the torch concat into per-feature affine tables A, B (input_dim, OUT):
         out[b, d, :] = x[b, d] * A[d, :] + B[d, :]
    """
    input_dim = embedding_weights.shape[0]
    if metadata is not None:
        w_total = jnp.concatenate([embedding_weights, metadata], axis=1)
    else:
        w_total = embedding_weights
    w_total = w_total.astype(jnp.float32)
    bias = embedding_bias.astype(jnp.float32)
    e_total = w_total.shape[1]
    ones1 = jnp.ones((input_dim, 1), jnp.float32)
    zeros1 = jnp.zeros((input_dim, 1), jnp.float32)
    zeros_e = jnp.zeros((input_dim, e_total), jnp.float32)
    if multiply_weights:
        a_tab = jnp.concatenate([ones1, w_total, zeros1], axis=1)
        b_tab = jnp.concatenate([zeros1, zeros_e, bias], axis=1)
    else:
        a_tab = jnp.concatenate([ones1, zeros_e, zeros1], axis=1)
        b_tab = jnp.concatenate([zeros1, w_total, bias], axis=1)
    return a_tab, b_tab


def _expand_tables(a_tab, b_tab, d_tile, num_d):
    """Expand A into the stacked block-diagonal MXU operand E and flatten B.

    E_stacked[j*DT + d, d2*OUT + o] = (d == d2) * A[j*DT + d, o]
    so x_tile @ E_block_j performs the per-feature broadcast multiply while
    producing a lane-dense (DT*OUT) output row.
    """
    input_dim, out_dim = a_tab.shape
    input_dim_pad = d_tile * num_d
    if input_dim_pad != input_dim:
        pad = input_dim_pad - input_dim
        a_tab = jnp.pad(a_tab, ((0, pad), (0, 0)))
        b_tab = jnp.pad(b_tab, ((0, pad), (0, 0)))
    a_blk = a_tab.reshape(num_d, d_tile, out_dim)
    eye = jnp.eye(d_tile, dtype=jnp.float32)
    e = eye[None, :, :, None] * a_blk[:, :, None, :]      # (num_d, DT, DT, OUT)
    e_stacked = e.reshape(num_d * d_tile, d_tile * out_dim)
    b_flat = b_tab.reshape(1, input_dim_pad * out_dim)
    return e_stacked, b_flat


def feature_embedder_forward(x, embedding_weights, embedding_bias, metadata,
                             multiply_weights, *, out_dtype=jnp.float32):
    """JAX/Pallas equivalent of FeatureEmbedder.forward.

    Args:
      x: (batch, input_dim) float32.
      embedding_weights: (input_dim, embedding_dim) float32.
      embedding_bias: (input_dim, 1) float32.
      metadata: optional (input_dim, metadata_dim) float32 or None.
      multiply_weights: python bool.
      out_dtype: output dtype (float32 keeps torch numerics; bfloat16 halves the
        HBM writeback if the downstream consumer tolerates it).

    Returns:
      (batch * input_dim, output_dim) array,
      output_dim = metadata_dim + embedding_dim + 2.
    """
    batch, input_dim = x.shape
    a_tab, b_tab = _build_affine_tables(embedding_weights, embedding_bias,
                                        metadata, multiply_weights)
    output_dim = a_tab.shape[1]

    vmem_cap = _vmem_capacity_bytes()
    budget = int(vmem_cap * 0.4)                 # generation-aware working-set target
    vmem_limit = int(min(vmem_cap, budget + (8 << 20)))

    batch_tile, num_bt, d_tile, num_d = _choose_tiles(batch, input_dim,
                                                      output_dim, budget)
    input_dim_pad = d_tile * num_d
    padded_batch = batch_tile * num_bt
    tile_out = d_tile * output_dim
    flat_out = input_dim_pad * output_dim

    e_stacked, b_flat = _expand_tables(a_tab, b_tab, d_tile, num_d)

    x = x.astype(jnp.float32)
    if padded_batch != batch or input_dim_pad != input_dim:
        x = jnp.pad(x, ((0, padded_batch - batch), (0, input_dim_pad - input_dim)))

    out2d = pl.pallas_call(
        _feature_embedder_kernel,
        out_shape=jax.ShapeDtypeStruct((padded_batch, flat_out), out_dtype),
        grid_spec=pltpu.PrefetchScalarGridSpec(
            num_scalar_prefetch=0,
            grid=(num_bt, num_d),
            in_specs=[
                # x: 2-D block, batch x feature tile.
                pl.BlockSpec((batch_tile, d_tile), lambda i, j: (i, j)),
                # E: block-diagonal table for feature tile j (batch-invariant).
                pl.BlockSpec((d_tile, tile_out), lambda i, j: (j, 0)),
                # B: flattened additive table for feature tile j.
                pl.BlockSpec((1, tile_out), lambda i, j: (0, j)),
            ],
            out_specs=pl.BlockSpec((batch_tile, tile_out), lambda i, j: (i, j)),
        ),
        compiler_params=pltpu.CompilerParams(
            dimension_semantics=("parallel", "parallel"),
            vmem_limit_bytes=vmem_limit),
        cost_estimate=pl.CostEstimate(
            flops=2 * padded_batch * input_dim_pad * d_tile * output_dim,
            transcendentals=0,
            bytes_accessed=4 * (padded_batch * input_dim_pad            # x
                                + num_bt * input_dim_pad * d_tile * output_dim  # E
                                + flat_out                              # B
                                + padded_batch * flat_out),             # out
        ),
    )(x, e_stacked, b_flat)

    # Row-major collapse back to the torch (batch*input_dim, output_dim) layout.
    if input_dim_pad == input_dim:
        out = out2d.reshape(padded_batch * input_dim, output_dim)   # free reshape
        if padded_batch != batch:
            out = out[: batch * input_dim]
    else:
        out = out2d.reshape(padded_batch, input_dim_pad, output_dim)
        out = out[:batch, :input_dim].reshape(batch * input_dim, output_dim)
    return out


def _xavier_uniform(key, shape):
    # torch.nn.init.xavier_uniform_ for a 2-D tensor: fan_out, fan_in = shape.
    fan_out, fan_in = shape
    bound = (6.0 / (fan_in + fan_out)) ** 0.5
    return jax.random.uniform(key, shape, jnp.float32, -bound, bound)


def _reference_forward(x, w, bias, metadata, multiply_weights):
    # Pure-JAX reference mirroring the PyTorch forward exactly.
    batch, input_dim = x.shape
    x_flat = x.reshape(batch * input_dim, 1)
    if metadata is not None:
        w_total = jnp.concatenate([w, metadata], axis=1)
    else:
        w_total = w
    rep_w = jnp.tile(w_total[None], (batch, 1, 1)).reshape(batch * input_dim, -1)
    rep_b = jnp.tile(bias[None], (batch, 1, 1)).reshape(batch * input_dim, 1)
    if multiply_weights:
        parts = [x_flat, x_flat * rep_w, rep_b]
    else:
        parts = [x_flat, rep_w, rep_b]
    return jnp.concatenate(parts, axis=1)


if __name__ == "__main__":
    batch = 2
    input_dim = 16
    embedding_dim = 8
    metadata_dim = 6

    key = jax.random.PRNGKey(0)
    k_x, k_w, k_b, k_m = jax.random.split(key, 4)

    x = jax.random.normal(k_x, (batch, input_dim), jnp.float32)
    embedding_weights = _xavier_uniform(k_w, (input_dim, embedding_dim))
    embedding_bias = _xavier_uniform(k_b, (input_dim, 1))
    metadata = jax.random.normal(k_m, (input_dim, metadata_dim), jnp.float32)

    # Case 1: multiply_weights=True, with metadata.
    out = jax.block_until_ready(
        feature_embedder_forward(x, embedding_weights, embedding_bias,
                                 metadata, True))
    ref = _reference_forward(x, embedding_weights, embedding_bias, metadata, True)
    assert out.shape == (batch * input_dim, metadata_dim + embedding_dim + 2)
    assert jnp.allclose(out, ref, atol=1e-5, rtol=1e-5), \
        float(jnp.max(jnp.abs(out - ref)))

    # Case 2: multiply_weights=False, no metadata.
    out2 = jax.block_until_ready(
        feature_embedder_forward(x, embedding_weights, embedding_bias,
                                 None, False))
    ref2 = _reference_forward(x, embedding_weights, embedding_bias, None, False)
    assert out2.shape == (batch * input_dim, embedding_dim + 2)
    assert jnp.allclose(out2, ref2, atol=1e-5, rtol=1e-5), \
        float(jnp.max(jnp.abs(out2 - ref2)))

    print("KERNEL_OK")
</pallas_src>

<mosaic_0001>
module attributes {stable_mosaic.version = 11 : i64} {
  func.func @_feature_embedder_kernel(%arg0: i32, %arg1: i32, %arg2: memref<2x16xf32, #tpu.memory_space<vmem>>, %arg3: memref<16x256xf32, #tpu.memory_space<vmem>>, %arg4: memref<1x256xf32, #tpu.memory_space<vmem>>, %arg5: memref<2x256xf32, #tpu.memory_space<vmem>>) attributes {dimension_semantics = [#tpu.dimension_semantics<parallel>, #tpu.dimension_semantics<parallel>], iteration_bounds = array<i64: 1, 1>, scalar_prefetch = 0 : i64, scratch_operands = 0 : i64, tpu.core_type = #tpu.core_type<tc>, window_params = [{transform_indices = @transform_0, window_bounds = array<i64: 2, 16>}, {transform_indices = @transform_1, window_bounds = array<i64: 16, 256>}, {transform_indices = @transform_2, window_bounds = array<i64: 1, 256>}, {transform_indices = @transform_3, window_bounds = array<i64: 2, 256>}]} {
    %c0 = arith.constant 0 : index
    %c0_0 = arith.constant 0 : index
    %0 = vector.load %arg2[%c0, %c0_0] : memref<2x16xf32, #tpu.memory_space<vmem>>, vector<2x16xf32>
    %c0_1 = arith.constant 0 : index
    %c0_2 = arith.constant 0 : index
    %1 = vector.load %arg3[%c0_1, %c0_2] : memref<16x256xf32, #tpu.memory_space<vmem>>, vector<16x256xf32>
    %cst = arith.constant dense<0.000000e+00> : vector<2x256xf32>
    %2 = tpu.matmul %0, %1, %cst {dimension_numbers = #tpu.dot_dimension_numbers<[1], [0], [0], [1], [0, 0, 1, 1], [], []>, precision = #tpu.contract_precision<fp32>} : vector<2x16xf32>, vector<16x256xf32>, vector<2x256xf32> -> vector<2x256xf32>
    %c0_3 = arith.constant 0 : index
    %c0_4 = arith.constant 0 : index
    %3 = vector.load %arg4[%c0_3, %c0_4] : memref<1x256xf32, #tpu.memory_space<vmem>>, vector<1x256xf32>
    %4 = vector.broadcast %3 : vector<1x256xf32> to vector<2x256xf32>
    %5 = arith.addf %2, %4 : vector<2x256xf32>
    %c0_5 = arith.constant 0 : index
    %c0_6 = arith.constant 0 : index
    %6 = vector.load %arg5[%c0_5, %c0_6] : memref<2x256xf32, #tpu.memory_space<vmem>>, vector<2x256xf32>
    tpu.vector_store %arg5[%c0_5, %c0_6], %5 {strides = array<i32>} : memref<2x256xf32, #tpu.memory_space<vmem>>, vector<2x256xf32>,
    return
  }
  func.func @transform_0(%arg0: i32, %arg1: i32) -> (i32, i32) {
    %c0_i32 = arith.constant 0 : i32
    return %arg0, %arg1 : i32, i32
  }
  func.func @transform_1(%arg0: i32, %arg1: i32) -> (i32, i32) {
    %c0_i32 = arith.constant 0 : i32
    %c0_i32_0 = arith.constant 0 : i32
    return %arg1, %c0_i32 : i32, i32
  }
  func.func @transform_2(%arg0: i32, %arg1: i32) -> (i32, i32) {
    %c0_i32 = arith.constant 0 : i32
    %c0_i32_0 = arith.constant 0 : i32
    return %c0_i32, %arg1 : i32, i32
  }
  func.func @transform_3(%arg0: i32, %arg1: i32) -> (i32, i32) {
    %c0_i32 = arith.constant 0 : i32
    return %arg0, %arg1 : i32, i32
  }
}

</mosaic_0001>

<bundles_post_ra>
// kernel: tpu_custom_call.1
= control target key start
LH: loop header
LB: loop body
LE: loop exit
PB: predicated region body
PF: predicated region fallthrough
CT: control target
= control target key end

     0   :  { %8 = vsyncpa [#allocation3], 0  ;;  %s768_s0 = inlined_call_operand.hbm [shape: f32[2,16], index: 0, kind: input, shape index: {}]   ;;  %s769_s1 = inlined_call_operand.hbm [shape: f32[16,256], index: 1, kind: input, shape index: {}]   ;;  %s770_s2 = inlined_call_operand.vmem [shape: f32[1,256], index: 2, kind: input, shape index: {}]   ;;  %s771_s3 = inlined_call_operand.hbm [shape: f32[2,256], index: 3, kind: output, shape index: {}]  }
   0x1   :  { %9 = vsyncpa [#allocation6], 0 }
   0x2   :  { %10 = vsyncpa [#allocation4], 0  ;;  %s696_s12 = smov [#allocation2]   ;;  %s697_s14 = smov [#allocation5]  }
   0x3   :  { %s17_s13 = sshll.u32 %s696_s12, 4  ;;  %s26_s15 = sshll.u32 %s697_s14, 4  ;;  %s18_s13 = int_to_ptr.vmem [resolvable:$true] %s17_s13  ;;  %s722_s15 = int_to_ptr.vmem [resolvable:$true] %s26_s15 }
   0x4   :  { %s624_s18 = scalar_lea.hbm %s768_s0, 32 }
   0x5   :  { %p625_p0 = scmp.ne.s32.totalorder %s768_s0, %s624_s18  ;;  %p628_p1 = scmp.lt.u32.totalorder %s624_s18, %s768_s0 }
   0x7   :  { %p630_p2 = pnand %p628_p1, %p625_p0 }
   0x9   :  { %633 = shalt.err (!%p630_p2)
}
   0xa   :  { %s634_s23 = scalar_lea.vmem %s18_s13, 32  ;;  %p639_p4 = scmp.lt.s32.totalorder %s18_s13, %s18_s13 }
   0xb   :  { %p635_p3 = scmp.ne.s32.totalorder %s18_s13, %s634_s23  ;;  %p640_p5 = scmp.lt.s32.totalorder %s634_s23, %s634_s23 }
   0xd   :  { %p641_p6 = por %p640_p5, %p639_p4 }
   0xf   :  { %p642_p7 = pnand %p641_p6, %p635_p3 }
  0x11   :  { %645 = shalt.err (!%p642_p7)
}
  0x12   :  { %20 = dma.hbm_to_vmem [thread:$0]  %s768_s0, 32, %s18_s13, [#allocation3]  }
  0x13   :  { %s646_s28 = scalar_lea.hbm %s769_s1, 512 }
  0x14   :  { %p647_p8 = scmp.ne.s32.totalorder %s769_s1, %s646_s28  ;;  %p650_p9 = scmp.lt.u32.totalorder %s646_s28, %s769_s1 }
  0x16   :  { %p652_p10 = pnand %p650_p9, %p647_p8 }
  0x18   :  { %655 = shalt.err (!%p652_p10)
}
  0x19   :  { %s656_s6 = scalar_lea.vmem %s722_s15, 512  ;;  %p661_p12 = scmp.lt.s32.totalorder %s722_s15, %s722_s15 }
  0x1a   :  { %p657_p11 = scmp.ne.s32.totalorder %s722_s15, %s656_s6  ;;  %p662_p13 = scmp.lt.s32.totalorder %s656_s6, %s656_s6 }
  0x1c   :  { %p663_p0 = por %p662_p13, %p661_p12 }
  0x1e   :  { %p664_p1 = pnand %p663_p0, %p657_p11 }
  0x20   :  { %667 = shalt.err (!%p664_p1)
}
  0x21   :  { %s698_s0 = smov 256   ;;  %s699_s7 = smov 16  }
  0x22   :  { %32 = dma.hbm_to_vmem [thread:$0]  %s769_s1, 512, %s722_s15, [#allocation6], %s698_s0, %s698_s0, %s699_s7  }
  0x23   :  { %690 = dma.done.wait [#allocation3], 32  }
  0x24   :  { %691 = vsyncadd [#allocation3], 4294967264 }
  0x25   :  { %692 = dma.done.wait [#allocation6], 512  }
  0x26   :  { %693 = vsyncadd [#allocation6], 4294966784  ;;  %v700_v0 = vmov 0.0   ;;  %vm58_vm0 = vcmask 130048   ;;  %v43_v1 = vld [vmem:[#allocation5 + $0x8] sm:$0xff]  ;;  %v45_v2 = vld [vmem:[#allocation5 + $0x18] sm:$0xff]  ;;  %v48_v40 = vlaneseq }
  0x27   :  { %383 = vmatprep.mubr.f32.mxu0 %v700_v0  ;;  %130 = vmatprep.mubr.f32.mxu1 %v700_v0  ;;  %v42_v3 = vld [vmem:[#allocation5] sm:$0xff]  ;;  %v62_v4 = vand.u32 4294901760, %v43_v1  ;;  %v66_v5 = vand.u32 4294901760, %v45_v2  ;;  %v44_v6 = vld [vmem:[#allocation5 + $0x10] sm:$0xff]  ;;  %v41_v8 = vld [vmem:[#allocation2] sm:$0x3] }
  0x28   :  { %v64_v7 = vand.u32 4294901760, %v42_v3  ;;  %v68_v9 = vand.u32 4294901760, %v44_v6  ;;  %v60_v10 = vsel %vm58_vm0, %v41_v8, 0  ;;  %v49_v41 = vshrl.u32 %v48_v40, 7  ;;  %v46_v43 = vld [vmem:[%s770_s2] sm:$0x3] }
  0x29   :  { %v582_v11 = vpack.c.bf16 %v66_v5, %v62_v4  ;;  %v143_v12 = vsub.f32 %v43_v1, %v62_v4  ;;  %v155_v13 = vsub.f32 %v45_v2, %v66_v5  ;;  %v131_v17 = vand.u32 4294901760, %v60_v10  ;;  %s701_s11 = smov [#allocation7]  }
  0x2a   :  { %v149_v14 = vsub.f32 %v42_v3, %v64_v7  ;;  %v584_v15 = vpack.c.bf16 %v68_v9, %v64_v7  ;;  %v161_v16 = vsub.f32 %v44_v6, %v68_v9  ;;  %v50_v42 = vsub.s32 0, %v49_v41  ;;  %s571_s12 = sshll.u32 %s701_s11, 4  ;;  %s572_s12 = int_to_ptr.vmem [resolvable:$true] %s571_s12 }
  0x2b   :  { %595 = vmatprep.subr.bf16.mxu0 %v582_v11  ;;  %583 = vmatprep.subr.bf16.mxu1 %v582_v11  ;;  %v144_v18 = vand.u32 4294901760, %v143_v12  ;;  %v156_v19 = vand.u32 4294901760, %v155_v13  ;;  %v132_v21 = vsub.f32 %v60_v10, %v131_v17  ;;  %v590_v38 = vpack.c.bf16 %v155_v13, %v143_v12  ;;  %s668_s13 = scalar_lea.vmem %s572_s12, 64  ;;  %p673_p3 = scmp.lt.s32.totalorder %s572_s12, %s572_s12 }
  0x2c   :  { %v150_v20 = vand.u32 4294901760, %v149_v14  ;;  %597 = vmatpush1.bf16.msra.mxu0 %v584_v15  ;;  %585 = vmatpush1.bf16.msra.mxu1 %v584_v15  ;;  %v162_v22 = vand.u32 4294901760, %v161_v16  ;;  %v592_v39 = vpack.c.bf16 %v161_v16, %v149_v14  ;;  %v54_v44 = vsub.s32 1, %v49_v41  ;;  %p669_p2 = scmp.ne.s32.totalorder %s572_s12, %s668_s13  ;;  %p674_p4 = scmp.lt.s32.totalorder %s668_s13, %s668_s13 }
  0x2d   :  { %v145_v23 = vsub.f32 %v143_v12, %v144_v18  ;;  %v157_v24 = vsub.f32 %v155_v13, %v156_v19  ;;  %v598_v25 = vpack.c.bf16 %v156_v19, %v144_v18  ;;  %v133_v27 = vand.u32 4294901760, %v132_v21 }
  0x2e   :  { %v151_v26 = vsub.f32 %v149_v14, %v150_v20  ;;  %v163_v28 = vsub.f32 %v161_v16, %v162_v22  ;;  %v600_v29 = vpack.c.bf16 %v162_v22, %v150_v20  ;;  %v51_v47 = vrot.slane %v46_v43, %v50_v42  ;;  %p675_p5 = por %p674_p4, %p673_p3 }
  0x2f   :  { %v146_v30 = vand.u32 4294901760, %v145_v23  ;;  %v158_v31 = vand.u32 4294901760, %v157_v24  ;;  %599 = vmatprep.subr.bf16.mxu0 %v598_v25  ;;  %387 = vmatmul.mubr.f32.vlgmr.msra.gmra.mrb[0].mxu0 %v133_v27  ;;  %v134_v33 = vsub.f32 %v132_v21, %v133_v27  ;;  %v55_v48 = vrot.slane %v46_v43, %v54_v44 }
  0x30   :  { %v152_v32 = vand.u32 4294901760, %v151_v26  ;;  %v164_v34 = vand.u32 4294901760, %v163_v28  ;;  %601 = vmatpush1.bf16.msra.mxu0 %v600_v29  ;;  %469 = vmatprep.mubr.f32.mxu0 %v700_v0  ;;  %p676_p6 = pnand %p675_p5, %p669_p2 }
  0x31   :  { %v586_v35 = vpack.c.bf16 %v158_v31, %v146_v30  ;;  %v135_v36 = vand.u32 4294901760, %v134_v33  ;;  %603 = vmatprep.subr.bf16.mxu0 %v582_v11 }
  0x32   :  { %v588_v37 = vpack.c.bf16 %v164_v34, %v152_v32 }
  0x33   :  { %587 = vmatprep.subr.bf16.mxu1 %v586_v35  ;;  %136 = vmatmul.mubr.f32.vlgmr.msra.gmra.mrb[0].mxu1 %v135_v36 }
  0x34   :  { %589 = vmatpush1.bf16.msra.mxu1 %v588_v37  ;;  %226 = vmatprep.mubr.f32.mxu1 %v700_v0 }
  0x35   :  { %591 = vmatprep.subr.bf16.mxu1 %v590_v38 }
  0x37   :  { %471 = vmatmul.mubr.f32.vlgmr.msra.gmra.mrb[0].mxu0 %v131_v17 }
  0x38   :  { %605 = vmatpush1.bf16.msra.mxu0 %v584_v15  ;;  %545 = vmatprep.mubr.f32.mxu0 %v700_v0 }
  0x3b   :  { %228 = vmatmul.mubr.f32.vlgmr.msra.gmra.mrb[0].mxu1 %v131_v17 }
  0x3c   :  { %593 = vmatpush1.bf16.msra.mxu1 %v592_v39  ;;  %306 = vmatprep.mubr.f32.mxu1 %v700_v0 }
  0x3f   :  { %547 = vmatmul.mubr.f32.vlgmr.msra.gmra.mrb[0].mxu0 %v131_v17 }
  0x43   :  { %309 = vmatmul.mubr.f32.vlgmr.msra.gmra.mrb[0].mxu1 %v132_v21 }
 0x112   :  { %v548_v45 = vpop.f32.mrb[0].mxu0 }
 0x113   :  { %v550_v46 = vpop.f32.mrb[1].mxu0 }
 0x116   :  { %v310_v49 = vpop.f32.mrb[0].mxu1 }
 0x117   :  { %v606_v50 = vadd.f32 %v310_v49, %v51_v47  ;;  %v312_v51 = vpop.f32.mrb[1].mxu1 }
 0x118   :  { %v608_v52 = vadd.f32 %v312_v51, %v55_v48 }
 0x119   :  { %v607_v53 = vadd.f32 %v606_v50, %v548_v45 }
 0x11a   :  { %v609_v54 = vadd.f32 %v608_v52, %v550_v46 }
 0x11c   :  { %v555_v55 = vcombine.low %v607_v53, %v609_v54 }
 0x11e   :  { %581 = vst.sshfl [vmem:[#allocation7] sm:$0x33 pattern:$0x76325410] %v555_v55 }
 0x11f   :  { %679 = shalt.err (!%p676_p6)
}
 0x120   :  { %s680_s15 = scalar_lea.hbm %s771_s3, 64 }
 0x121   :  { %p681_p7 = scmp.ne.s32.totalorder %s771_s3, %s680_s15  ;;  %p684_p8 = scmp.lt.u32.totalorder %s680_s15, %s771_s3 }
 0x123   :  { %p686_p9 = pnand %p684_p8, %p681_p7 }
 0x125   :  { %689 = shalt.err (!%p686_p9)
}
 0x126   :  { %574 = dma.vmem_to_hbm [thread:$0]  %s572_s12, 64, %s771_s3, [#allocation4]  }
 0x127   :  { %694 = dma.done.wait [#allocation4], 64  }
 0x128   :  { %695 = vsyncadd [#allocation4], 4294967232 }
 0x129   :  { %578 = vsyncpa [#allocation3], 1 }
 0x12a   :  { %579 = vsyncpa [#allocation6], 1 }
 0x12b   :  { %580 = vsyncpa [#allocation4], 1 }

</bundles_post_ra>
